<compile_context>
chip_gen: v6e
topology: v6e:2x2x1
jax: 0.10.0
libtpu: 0.0.40
codegen_flags: <defaults>
</compile_context>

<pallas_src>
import functools
import math

import jax
import jax.numpy as jnp
from jax.experimental import pallas as pl
from jax.experimental.pallas import tpu as pltpu

_NEG_INF = -1e30


def _round_up(x: int, m: int) -> int:
    return ((x + m - 1) // m) * m


def _tile(dim: int, cap: int):
    """Tile size + padded extent for one GEMM dim.

    If the dim fits in one block we use a full-extent block (no padding,
    allowed by the Mosaic layout rule); otherwise cap-sized aligned tiles.
    """
    if dim <= cap:
        return dim, dim
    return cap, _round_up(dim, cap)


# ---------------------------------------------------------------------------
# Batched tiled linear: out[g] = x[g] @ w[g] + b[g], f32 accumulation.
# Grid = (G, M/tm, N/tn, K/tk); K is the reduction axis (last, "arbitrary").
# ---------------------------------------------------------------------------
def _matmul_bias_kernel(x_ref, w_ref, b_ref, o_ref, acc_ref):
    k = pl.program_id(3)

    @pl.when(k == 0)
    def _():
        acc_ref[...] = jnp.zeros_like(acc_ref)

    acc_ref[...] += jnp.dot(
        x_ref[...], w_ref[...], preferred_element_type=jnp.float32
    )

    @pl.when(k == pl.num_programs(3) - 1)
    def _():
        o_ref[...] = (acc_ref[...] + b_ref[...].astype(jnp.float32)).astype(o_ref.dtype)


def _batched_linear(x, w, b, *, tm_cap=256, tn_cap=512, tk_cap=512):
    """x: (G, M, K); w: (G, K, N); b: (G, 1, N) -> (G, M, N)."""
    G, M, K = x.shape
    _, K2, N = w.shape
    assert K == K2, (K, K2)

    tm, Mp = _tile(M, tm_cap)   # sublane dim (mult of 8 when tiled)
    tn, Np = _tile(N, tn_cap)   # lane dim (mult of 128 when tiled)
    tk, Kp = _tile(K, tk_cap)   # lane dim of x / sublane of w

    if (Mp, Kp) != (M, K):
        x = jnp.pad(x, ((0, 0), (0, Mp - M), (0, Kp - K)))
    if (Kp, Np) != (K, N):
        w = jnp.pad(w, ((0, 0), (0, Kp - K), (0, Np - N)))
    if Np != N:
        b = jnp.pad(b, ((0, 0), (0, 0), (0, Np - N)))

    grid = (G, Mp // tm, Np // tn, Kp // tk)
    itemsize = x.dtype.itemsize

    out = pl.pallas_call(
        _matmul_bias_kernel,
        out_shape=jax.ShapeDtypeStruct((G, Mp, Np), x.dtype),
        grid_spec=pltpu.PrefetchScalarGridSpec(
            num_scalar_prefetch=0,
            grid=grid,
            in_specs=[
                pl.BlockSpec((None, tm, tk), lambda g, i, j, k: (g, i, k)),
                pl.BlockSpec((None, tk, tn), lambda g, i, j, k: (g, k, j)),
                pl.BlockSpec((None, 1, tn), lambda g, i, j, k: (g, 0, j)),
            ],
            out_specs=pl.BlockSpec((None, tm, tn), lambda g, i, j, k: (g, i, j)),
            scratch_shapes=[pltpu.VMEM((tm, tn), jnp.float32)],
        ),
        compiler_params=pltpu.CompilerParams(
            dimension_semantics=("parallel", "parallel", "parallel", "arbitrary"),
        ),
        cost_estimate=pl.CostEstimate(
            flops=2 * G * Mp * Np * Kp,
            transcendentals=0,
            bytes_accessed=G * (Mp * Kp + Kp * Np + Mp * Np + Np) * itemsize,
        ),
    )(x, w, b)

    if (Mp, Np) != (M, N):
        out = out[:, :M, :N]
    return out


# ---------------------------------------------------------------------------
# Flash-style scaled dot-product attention over the full feature dim
# (this module never splits heads), with optional boolean/int mask.
# ---------------------------------------------------------------------------
def _flash_attention_kernel(*refs, sm_scale, seq_len, blk_kv, has_mask):
    if has_mask:
        q_ref, k_ref, v_ref, mask_ref, o_ref, m_sc, l_sc, acc_sc = refs
    else:
        q_ref, k_ref, v_ref, o_ref, m_sc, l_sc, acc_sc = refs
        mask_ref = None

    kv_i = pl.program_id(2)

    @pl.when(kv_i == 0)
    def _():
        m_sc[...] = jnp.full_like(m_sc, _NEG_INF)
        l_sc[...] = jnp.zeros_like(l_sc)
        acc_sc[...] = jnp.zeros_like(acc_sc)

    q = q_ref[...]   # (blk_q, N)
    k = k_ref[...]   # (blk_kv, N)
    v = v_ref[...]   # (blk_kv, N)

    s = jax.lax.dot_general(
        q, k, (((1,), (1,)), ((), ())), preferred_element_type=jnp.float32
    ) * sm_scale     # (blk_q, blk_kv)

    # Mask out padded key columns (seq padding) and, if given, the user mask
    # (PyTorch: masked_fill(mask == 0, -inf)).
    col = kv_i * blk_kv + jax.lax.broadcasted_iota(jnp.int32, s.shape, 1)
    valid = col < seq_len
    if mask_ref is not None:
        valid = jnp.logical_and(valid, mask_ref[...] != 0)
    s = jnp.where(valid, s, _NEG_INF)

    m_prev = m_sc[...]
    m_new = jnp.maximum(m_prev, jnp.max(s, axis=-1, keepdims=True))
    alpha = jnp.exp(m_prev - m_new)
    p = jnp.exp(s - m_new)

    l_sc[...] = alpha * l_sc[...] + jnp.sum(p, axis=-1, keepdims=True)
    acc_sc[...] = alpha * acc_sc[...] + jnp.dot(
        p.astype(v.dtype), v, preferred_element_type=jnp.float32
    )
    m_sc[...] = m_new

    @pl.when(kv_i == pl.num_programs(2) - 1)
    def _():
        o_ref[...] = (acc_sc[...] / l_sc[...]).astype(o_ref.dtype)


def _flash_attention(q, k, v, mask=None, *, blk_cap=128):
    """q, k, v: (B, S, N).  Returns softmax(q k^T / sqrt(N) [+mask]) v."""
    B, S, N = q.shape
    sm_scale = 1.0 / math.sqrt(N)

    blk = min(blk_cap, _round_up(S, 8))
    Sp = _round_up(S, blk)
    if Sp != S:
        pad = ((0, 0), (0, Sp - S), (0, 0))
        q, k, v = jnp.pad(q, pad), jnp.pad(k, pad), jnp.pad(v, pad)

    has_mask = mask is not None
    inputs = [q, k, v]
    in_specs = [
        pl.BlockSpec((None, blk, N), lambda b, qi, ki: (b, qi, 0)),
        pl.BlockSpec((None, blk, N), lambda b, qi, ki: (b, ki, 0)),
        pl.BlockSpec((None, blk, N), lambda b, qi, ki: (b, ki, 0)),
    ]
    if has_mask:
        m = jnp.broadcast_to(mask, (B, S, S)).astype(jnp.int32)
        if Sp != S:
            m = jnp.pad(m, ((0, 0), (0, Sp - S), (0, Sp - S)))
        inputs.append(m)
        in_specs.append(pl.BlockSpec((None, blk, blk), lambda b, qi, ki: (b, qi, ki)))

    grid = (B, Sp // blk, Sp // blk)
    kernel = functools.partial(
        _flash_attention_kernel,
        sm_scale=sm_scale, seq_len=S, blk_kv=blk, has_mask=has_mask,
    )
    itemsize = q.dtype.itemsize

    out = pl.pallas_call(
        kernel,
        out_shape=jax.ShapeDtypeStruct((B, Sp, N), q.dtype),
        grid_spec=pltpu.PrefetchScalarGridSpec(
            num_scalar_prefetch=0,
            grid=grid,
            in_specs=in_specs,
            out_specs=pl.BlockSpec((None, blk, N), lambda b, qi, ki: (b, qi, 0)),
            scratch_shapes=[
                pltpu.VMEM((blk, 1), jnp.float32),   # running max m
                pltpu.VMEM((blk, 1), jnp.float32),   # running denom l
                pltpu.VMEM((blk, N), jnp.float32),   # output accumulator
            ],
        ),
        compiler_params=pltpu.CompilerParams(
            dimension_semantics=("parallel", "parallel", "arbitrary"),
        ),
        cost_estimate=pl.CostEstimate(
            flops=4 * B * Sp * Sp * N,
            transcendentals=B * Sp * Sp,
            bytes_accessed=4 * B * Sp * N * itemsize,
        ),
    )(*inputs)

    return out[:, :S, :] if Sp != S else out


# ---------------------------------------------------------------------------
# MultiHeadAttention forward (matches the PyTorch module semantics).
# ---------------------------------------------------------------------------
def multi_head_attention_forward(params, Q, K, V, mask=None):
    B, S, d_model = Q.shape

    # Fused Q/K/V projections: one batched GEMM over the stacked inputs.
    x_stack = jnp.stack([
        Q.reshape(B * S, d_model),
        K.reshape(B * S, d_model),
        V.reshape(B * S, d_model),
    ])                                                       # (3, B*S, d_model)
    qkv = _batched_linear(x_stack, params["w_qkv"], params["b_qkv"])  # (3, B*S, N)
    N = qkv.shape[-1]
    q = qkv[0].reshape(B, S, N)
    k = qkv[1].reshape(B, S, N)
    v = qkv[2].reshape(B, S, N)

    attn = _flash_attention(q, k, v, mask)

    out = _batched_linear(attn.reshape(1, B * S, N), params["w_fc"], params["b_fc"])
    return out[0].reshape(B, S, -1)
    # TODO(synk): attention weights (second return of ScaledDotProductAttention)
    # are never materialized — the flash kernel streams them; MultiHeadAttention
    # discards them anyway.


def init_multi_head_attention_params(key, d_model, n_heads, dtype=jnp.float32):
    """nn.Linear-style init; weights stored (in_features, out_features), QKV stacked."""
    kq, kk, kv, kf = jax.random.split(key, 4)
    N = d_model * n_heads

    def linear(k_, fan_in, fan_out):
        kw, kb = jax.random.split(k_)
        bound = 1.0 / math.sqrt(fan_in)
        w = jax.random.uniform(kw, (fan_in, fan_out), dtype, -bound, bound)
        b = jax.random.uniform(kb, (fan_out,), dtype, -bound, bound)
        return w, b

    wq, bq = linear(kq, d_model, N)
    wk, bk = linear(kk, d_model, N)
    wv, bv = linear(kv, d_model, N)
    wo, bo = linear(kf, N, d_model)

    return {
        # Q/K/V projections stacked once at init: (3, d_model, N) / (3, 1, N).
        "w_qkv": jnp.stack([wq, wk, wv]),
        "b_qkv": jnp.stack([bq, bk, bv]).reshape(3, 1, N),
        # Output projection with leading batch-of-1 dim for the same GEMM kernel.
        "w_fc": wo[None],                     # (1, N, d_model)
        "b_fc": bo.reshape(1, 1, d_model),    # (1, 1, d_model)
    }


def _reference_forward(params, Q, K, V, mask=None):
    """Pure-JAX reference with the same math as the PyTorch module."""
    wq, wk, wv = params["w_qkv"]
    bq, bk, bv = params["b_qkv"][:, 0, :]
    q = Q @ wq + bq
    k = K @ wk + bk
    v = V @ wv + bv
    logits = jnp.einsum("bqd,bkd->bqk", q, k) / math.sqrt(q.shape[-1])
    if mask is not None:
        logits = jnp.where(mask == 0, -jnp.inf, logits)
    w = jax.nn.softmax(logits, axis=-1)
    attn = jnp.einsum("bqk,bkd->bqd", w, v)
    return attn @ params["w_fc"][0] + params["b_fc"][0, 0]


if __name__ == "__main__":
    batch, seq, d_model, n_heads = 2, 8, 32, 4

    key = jax.random.PRNGKey(0)
    kq, kk, kv, kp, km = jax.random.split(key, 5)
    Q = jax.random.normal(kq, (batch, seq, d_model), dtype=jnp.float32)
    K = jax.random.normal(kk, (batch, seq, d_model), dtype=jnp.float32)
    V = jax.random.normal(kv, (batch, seq, d_model), dtype=jnp.float32)

    params = init_multi_head_attention_params(kp, d_model, n_heads)
    mha = jax.jit(multi_head_attention_forward)

    # Unmasked path.
    out = jax.block_until_ready(mha(params, Q, K, V))
    ref = _reference_forward(params, Q, K, V)
    assert out.shape == (batch, seq, d_model), out.shape
    err = float(jnp.max(jnp.abs(out - ref)))
    assert jnp.allclose(out, ref, atol=1e-4, rtol=1e-4), err

    # Masked path (each query row keeps at least one valid key).
    mask = (jax.random.uniform(km, (batch, seq, seq)) > 0.3).astype(jnp.int32)
    mask = mask.at[:, :, 0].set(1)
    out_m = jax.block_until_ready(mha(params, Q, K, V, mask))
    ref_m = _reference_forward(params, Q, K, V, mask)
    err_m = float(jnp.max(jnp.abs(out_m - ref_m)))
    assert jnp.allclose(out_m, ref_m, atol=1e-4, rtol=1e-4), err_m

    print("KERNEL_OK")
</pallas_src>

<mosaic_0001>
module attributes {stable_mosaic.version = 11 : i64} {
  func.func @_flash_attention_kernel(%arg0: i32, %arg1: i32, %arg2: i32, %arg3: memref<1x8x128xf32, #tpu.memory_space<vmem>>, %arg4: memref<1x8x128xf32, #tpu.memory_space<vmem>>, %arg5: memref<1x8x128xf32, #tpu.memory_space<vmem>>, %arg6: memref<1x8x128xf32, #tpu.memory_space<vmem>>, %arg7: memref<8x1xf32, #tpu.memory_space<vmem>>, %arg8: memref<8x1xf32, #tpu.memory_space<vmem>>, %arg9: memref<8x128xf32, #tpu.memory_space<vmem>>) attributes {dimension_semantics = [#tpu.dimension_semantics<parallel>, #tpu.dimension_semantics<parallel>, #tpu.dimension_semantics<arbitrary>], iteration_bounds = array<i64: 2, 1, 1>, scalar_prefetch = 0 : i64, scratch_operands = 3 : i64, tpu.core_type = #tpu.core_type<tc>, window_params = [{transform_indices = @transform_0, window_bounds = array<i64: 1, 8, 128>}, {transform_indices = @transform_1, window_bounds = array<i64: 1, 8, 128>}, {transform_indices = @transform_2, window_bounds = array<i64: 1, 8, 128>}, {transform_indices = @transform_3, window_bounds = array<i64: 1, 8, 128>}]} {
    %c0_i32 = arith.constant 0 : i32
    %0 = arith.cmpi eq, %arg2, %c0_i32 : i32
    %1 = arith.extui %0 : i1 to i32
    %c0_i32_0 = arith.constant 0 : i32
    %2 = arith.cmpi ne, %1, %c0_i32_0 : i32
    scf.if %2 {
      %cst_29 = arith.constant -1.000000e+30 : f32
      %45 = vector.broadcast %cst_29 : f32 to vector<8x1xf32>
      %c0_30 = arith.constant 0 : index
      %c0_31 = arith.constant 0 : index
      %46 = vector.load %arg7[%c0_30, %c0_31] : memref<8x1xf32, #tpu.memory_space<vmem>>, vector<8x1xf32>
      tpu.vector_store %arg7[%c0_30, %c0_31], %45 {strides = array<i32>} : memref<8x1xf32, #tpu.memory_space<vmem>>, vector<8x1xf32>,
      %cst_32 = arith.constant 0.000000e+00 : f32
      %47 = vector.broadcast %cst_32 : f32 to vector<8x1xf32>
      %c0_33 = arith.constant 0 : index
      %c0_34 = arith.constant 0 : index
      %48 = vector.load %arg8[%c0_33, %c0_34] : memref<8x1xf32, #tpu.memory_space<vmem>>, vector<8x1xf32>
      tpu.vector_store %arg8[%c0_33, %c0_34], %47 {strides = array<i32>} : memref<8x1xf32, #tpu.memory_space<vmem>>, vector<8x1xf32>,
      %cst_35 = arith.constant 0.000000e+00 : f32
      %49 = vector.broadcast %cst_35 : f32 to vector<8x128xf32>
      %c0_36 = arith.constant 0 : index
      %c0_37 = arith.constant 0 : index
      %50 = vector.load %arg9[%c0_36, %c0_37] : memref<8x128xf32, #tpu.memory_space<vmem>>, vector<8x128xf32>
      tpu.vector_store %arg9[%c0_36, %c0_37], %49 {strides = array<i32>} : memref<8x128xf32, #tpu.memory_space<vmem>>, vector<8x128xf32>,
    } else {
    }
    %c0 = arith.constant 0 : index
    %c0_1 = arith.constant 0 : index
    %c0_2 = arith.constant 0 : index
    %3 = vector.load %arg3[%c0, %c0_1, %c0_2] : memref<1x8x128xf32, #tpu.memory_space<vmem>>, vector<1x8x128xf32>
    %4 = vector.shape_cast %3 : vector<1x8x128xf32> to vector<8x128xf32>
    %c0_3 = arith.constant 0 : index
    %c0_4 = arith.constant 0 : index
    %c0_5 = arith.constant 0 : index
    %5 = vector.load %arg4[%c0_3, %c0_4, %c0_5] : memref<1x8x128xf32, #tpu.memory_space<vmem>>, vector<1x8x128xf32>
    %6 = vector.shape_cast %5 : vector<1x8x128xf32> to vector<8x128xf32>
    %c0_6 = arith.constant 0 : index
    %c0_7 = arith.constant 0 : index
    %c0_8 = arith.constant 0 : index
    %7 = vector.load %arg5[%c0_6, %c0_7, %c0_8] : memref<1x8x128xf32, #tpu.memory_space<vmem>>, vector<1x8x128xf32>
    %8 = vector.shape_cast %7 : vector<1x8x128xf32> to vector<8x128xf32>
    %cst = arith.constant dense<0.000000e+00> : vector<8x8xf32>
    %9 = tpu.matmul %4, %6, %cst {dimension_numbers = #tpu.dot_dimension_numbers<[1], [1], [0], [0], [0, 0, 1, 0], [], []>} : vector<8x128xf32>, vector<8x128xf32>, vector<8x8xf32> -> vector<8x8xf32>
    %cst_9 = arith.constant 0.0883883461 : f32
    %10 = vector.broadcast %cst_9 : f32 to vector<8x8xf32>
    %11 = arith.mulf %9, %10 : vector<8x8xf32>
    %c8_i32 = arith.constant 8 : i32
    %12 = arith.muli %arg2, %c8_i32 : i32
    %13 = tpu.iota {dimensions = array<i32: 1>} : vector<8x8xi32>
    %14 = vector.broadcast %12 : i32 to vector<8x8xi32>
    %15 = arith.addi %14, %13 : vector<8x8xi32>
    %c8_i32_10 = arith.constant 8 : i32
    %16 = vector.broadcast %c8_i32_10 : i32 to vector<8x8xi32>
    %17 = arith.cmpi slt, %15, %16 : vector<8x8xi32>
    %cst_11 = arith.constant -1.000000e+30 : f32
    %18 = vector.broadcast %cst_11 : f32 to vector<8x8xf32>
    %19 = arith.select %17, %11, %18 : vector<8x8xi1>, vector<8x8xf32>
    %c0_12 = arith.constant 0 : index
    %c0_13 = arith.constant 0 : index
    %20 = vector.load %arg7[%c0_12, %c0_13] : memref<8x1xf32, #tpu.memory_space<vmem>>, vector<8x1xf32>
    %cst_14 = arith.constant dense<0xFF800000> : vector<8xf32>
    %21 = vector.multi_reduction <maximumf>, %19, %cst_14 [1] : vector<8x8xf32> to vector<8xf32>
    %22 = vector.shape_cast %21 : vector<8xf32> to vector<8x1xf32>
    %23 = arith.maximumf %20, %22 : vector<8x1xf32>
    %24 = arith.subf %20, %23 : vector<8x1xf32>
    %25 = math.exp %24 : vector<8x1xf32>
    %26 = vector.broadcast %23 : vector<8x1xf32> to vector<8x8xf32>
    %27 = arith.subf %19, %26 : vector<8x8xf32>
    %28 = math.exp %27 : vector<8x8xf32>
    %c0_15 = arith.constant 0 : index
    %c0_16 = arith.constant 0 : index
    %29 = vector.load %arg8[%c0_15, %c0_16] : memref<8x1xf32, #tpu.memory_space<vmem>>, vector<8x1xf32>
    %30 = arith.mulf %25, %29 : vector<8x1xf32>
    %cst_17 = arith.constant dense<0.000000e+00> : vector<8xf32>
    %31 = vector.multi_reduction <add>, %28, %cst_17 [1] : vector<8x8xf32> to vector<8xf32>
    %32 = vector.shape_cast %31 : vector<8xf32> to vector<8x1xf32>
    %33 = arith.addf %30, %32 : vector<8x1xf32>
    %c0_18 = arith.constant 0 : index
    %c0_19 = arith.constant 0 : index
    %34 = vector.load %arg8[%c0_18, %c0_19] : memref<8x1xf32, #tpu.memory_space<vmem>>, vector<8x1xf32>
    tpu.vector_store %arg8[%c0_18, %c0_19], %33 {strides = array<i32>} : memref<8x1xf32, #tpu.memory_space<vmem>>, vector<8x1xf32>,
    %c0_20 = arith.constant 0 : index
    %c0_21 = arith.constant 0 : index
    %35 = vector.load %arg9[%c0_20, %c0_21] : memref<8x128xf32, #tpu.memory_space<vmem>>, vector<8x128xf32>
    %36 = vector.broadcast %25 : vector<8x1xf32> to vector<8x128xf32>
    %37 = arith.mulf %36, %35 : vector<8x128xf32>
    %cst_22 = arith.constant dense<0.000000e+00> : vector<8x128xf32>
    %38 = tpu.matmul %28, %8, %cst_22 {dimension_numbers = #tpu.dot_dimension_numbers<[1], [0], [0], [1], [0, 0, 1, 1], [], []>} : vector<8x8xf32>, vector<8x128xf32>, vector<8x128xf32> -> vector<8x128xf32>
    %39 = arith.addf %37, %38 : vector<8x128xf32>
    %c0_23 = arith.constant 0 : index
    %c0_24 = arith.constant 0 : index
    %40 = vector.load %arg9[%c0_23, %c0_24] : memref<8x128xf32, #tpu.memory_space<vmem>>, vector<8x128xf32>
    tpu.vector_store %arg9[%c0_23, %c0_24], %39 {strides = array<i32>} : memref<8x128xf32, #tpu.memory_space<vmem>>, vector<8x128xf32>,
    %c0_25 = arith.constant 0 : index
    %c0_26 = arith.constant 0 : index
    %41 = vector.load %arg7[%c0_25, %c0_26] : memref<8x1xf32, #tpu.memory_space<vmem>>, vector<8x1xf32>
    tpu.vector_store %arg7[%c0_25, %c0_26], %23 {strides = array<i32>} : memref<8x1xf32, #tpu.memory_space<vmem>>, vector<8x1xf32>,
    %c0_i32_27 = arith.constant 0 : i32
    %42 = arith.cmpi eq, %arg2, %c0_i32_27 : i32
    %43 = arith.extui %42 : i1 to i32
    %c0_i32_28 = arith.constant 0 : i32
    %44 = arith.cmpi ne, %43, %c0_i32_28 : i32
    scf.if %44 {
      %c0_29 = arith.constant 0 : index
      %c0_30 = arith.constant 0 : index
      %45 = vector.load %arg9[%c0_29, %c0_30] : memref<8x128xf32, #tpu.memory_space<vmem>>, vector<8x128xf32>
      %c0_31 = arith.constant 0 : index
      %c0_32 = arith.constant 0 : index
      %46 = vector.load %arg8[%c0_31, %c0_32] : memref<8x1xf32, #tpu.memory_space<vmem>>, vector<8x1xf32>
      %47 = vector.broadcast %46 : vector<8x1xf32> to vector<8x128xf32>
      %48 = arith.divf %45, %47 : vector<8x128xf32>
      %c0_33 = arith.constant 0 : index
      %c0_34 = arith.constant 0 : index
      %c0_35 = arith.constant 0 : index
      %49 = vector.load %arg6[%c0_33, %c0_34, %c0_35] : memref<1x8x128xf32, #tpu.memory_space<vmem>>, vector<1x8x128xf32>
      %50 = vector.shape_cast %49 : vector<1x8x128xf32> to vector<8x128xf32>
      %51 = vector.shape_cast %48 : vector<8x128xf32> to vector<1x8x128xf32>
      tpu.vector_store %arg6[%c0_33, %c0_34, %c0_35], %51 {strides = array<i32>} : memref<1x8x128xf32, #tpu.memory_space<vmem>>, vector<1x8x128xf32>,
    } else {
    }
    return
  }
  func.func @transform_0(%arg0: i32, %arg1: i32, %arg2: i32) -> (i32, i32, i32) {
    %c0_i32 = arith.constant 0 : i32
    %c0_i32_0 = arith.constant 0 : i32
    return %arg0, %arg1, %c0_i32 : i32, i32, i32
  }
  func.func @transform_1(%arg0: i32, %arg1: i32, %arg2: i32) -> (i32, i32, i32) {
    %c0_i32 = arith.constant 0 : i32
    %c0_i32_0 = arith.constant 0 : i32
    return %arg0, %arg2, %c0_i32 : i32, i32, i32
  }
  func.func @transform_2(%arg0: i32, %arg1: i32, %arg2: i32) -> (i32, i32, i32) {
    %c0_i32 = arith.constant 0 : i32
    %c0_i32_0 = arith.constant 0 : i32
    return %arg0, %arg2, %c0_i32 : i32, i32, i32
  }
  func.func @transform_3(%arg0: i32, %arg1: i32, %arg2: i32) -> (i32, i32, i32) {
    %c0_i32 = arith.constant 0 : i32
    %c0_i32_0 = arith.constant 0 : i32
    return %arg0, %arg1, %c0_i32 : i32, i32, i32
  }
}

module attributes {stable_mosaic.version = 11 : i64} {
  func.func @_matmul_bias_kernel(%arg0: i32, %arg1: i32, %arg2: i32, %arg3: i32, %arg4: memref<1x16x32xf32, #tpu.memory_space<vmem>>, %arg5: memref<1x32x128xf32, #tpu.memory_space<vmem>>, %arg6: memref<1x1x128xf32, #tpu.memory_space<vmem>>, %arg7: memref<1x16x128xf32, #tpu.memory_space<vmem>>, %arg8: memref<16x128xf32, #tpu.memory_space<vmem>>) attributes {dimension_semantics = [#tpu.dimension_semantics<parallel>, #tpu.dimension_semantics<parallel>, #tpu.dimension_semantics<parallel>, #tpu.dimension_semantics<arbitrary>], iteration_bounds = array<i64: 3, 1, 1, 1>, scalar_prefetch = 0 : i64, scratch_operands = 1 : i64, tpu.core_type = #tpu.core_type<tc>, window_params = [{transform_indices = @transform_0, window_bounds = array<i64: 1, 16, 32>}, {transform_indices = @transform_1, window_bounds = array<i64: 1, 32, 128>}, {transform_indices = @transform_2, window_bounds = array<i64: 1, 1, 128>}, {transform_indices = @transform_3, window_bounds = array<i64: 1, 16, 128>}]} {
    %c0_i32 = arith.constant 0 : i32
    %0 = arith.cmpi eq, %arg3, %c0_i32 : i32
    %1 = arith.extui %0 : i1 to i32
    %c0_i32_0 = arith.constant 0 : i32
    %2 = arith.cmpi ne, %1, %c0_i32_0 : i32
    scf.if %2 {
      %cst_12 = arith.constant 0.000000e+00 : f32
      %14 = vector.broadcast %cst_12 : f32 to vector<16x128xf32>
      %c0_13 = arith.constant 0 : index
      %c0_14 = arith.constant 0 : index
      %15 = vector.load %arg8[%c0_13, %c0_14] : memref<16x128xf32, #tpu.memory_space<vmem>>, vector<16x128xf32>
      tpu.vector_store %arg8[%c0_13, %c0_14], %14 {strides = array<i32>} : memref<16x128xf32, #tpu.memory_space<vmem>>, vector<16x128xf32>,
    } else {
    }
    %c0 = arith.constant 0 : index
    %c0_1 = arith.constant 0 : index
    %3 = vector.load %arg8[%c0, %c0_1] : memref<16x128xf32, #tpu.memory_space<vmem>>, vector<16x128xf32>
    %c0_2 = arith.constant 0 : index
    %c0_3 = arith.constant 0 : index
    %c0_4 = arith.constant 0 : index
    %4 = vector.load %arg4[%c0_2, %c0_3, %c0_4] : memref<1x16x32xf32, #tpu.memory_space<vmem>>, vector<1x16x32xf32>
    %5 = vector.shape_cast %4 : vector<1x16x32xf32> to vector<16x32xf32>
    %c0_5 = arith.constant 0 : index
    %c0_6 = arith.constant 0 : index
    %c0_7 = arith.constant 0 : index
    %6 = vector.load %arg5[%c0_5, %c0_6, %c0_7] : memref<1x32x128xf32, #tpu.memory_space<vmem>>, vector<1x32x128xf32>
    %7 = vector.shape_cast %6 : vector<1x32x128xf32> to vector<32x128xf32>
    %cst = arith.constant dense<0.000000e+00> : vector<16x128xf32>
    %8 = tpu.matmul %5, %7, %cst {dimension_numbers = #tpu.dot_dimension_numbers<[1], [0], [0], [1], [0, 0, 1, 1], [], []>} : vector<16x32xf32>, vector<32x128xf32>, vector<16x128xf32> -> vector<16x128xf32>
    %9 = arith.addf %3, %8 : vector<16x128xf32>
    %c0_8 = arith.constant 0 : index
    %c0_9 = arith.constant 0 : index
    %10 = vector.load %arg8[%c0_8, %c0_9] : memref<16x128xf32, #tpu.memory_space<vmem>>, vector<16x128xf32>
    tpu.vector_store %arg8[%c0_8, %c0_9], %9 {strides = array<i32>} : memref<16x128xf32, #tpu.memory_space<vmem>>, vector<16x128xf32>,
    %c0_i32_10 = arith.constant 0 : i32
    %11 = arith.cmpi eq, %arg3, %c0_i32_10 : i32
    %12 = arith.extui %11 : i1 to i32
    %c0_i32_11 = arith.constant 0 : i32
    %13 = arith.cmpi ne, %12, %c0_i32_11 : i32
    scf.if %13 {
      %c0_12 = arith.constant 0 : index
      %c0_13 = arith.constant 0 : index
      %14 = vector.load %arg8[%c0_12, %c0_13] : memref<16x128xf32, #tpu.memory_space<vmem>>, vector<16x128xf32>
      %c0_14 = arith.constant 0 : index
      %c0_15 = arith.constant 0 : index
      %c0_16 = arith.constant 0 : index
      %15 = vector.load %arg6[%c0_14, %c0_15, %c0_16] : memref<1x1x128xf32, #tpu.memory_space<vmem>>, vector<1x1x128xf32>
      %16 = vector.shape_cast %15 : vector<1x1x128xf32> to vector<1x128xf32>
      %17 = vector.broadcast %16 : vector<1x128xf32> to vector<16x128xf32>
      %18 = arith.addf %14, %17 : vector<16x128xf32>
      %c0_17 = arith.constant 0 : index
      %c0_18 = arith.constant 0 : index
      %c0_19 = arith.constant 0 : index
      %19 = vector.load %arg7[%c0_17, %c0_18, %c0_19] : memref<1x16x128xf32, #tpu.memory_space<vmem>>, vector<1x16x128xf32>
      %20 = vector.shape_cast %19 : vector<1x16x128xf32> to vector<16x128xf32>
      %21 = vector.shape_cast %18 : vector<16x128xf32> to vector<1x16x128xf32>
      tpu.vector_store %arg7[%c0_17, %c0_18, %c0_19], %21 {strides = array<i32>} : memref<1x16x128xf32, #tpu.memory_space<vmem>>, vector<1x16x128xf32>,
    } else {
    }
    return
  }
  func.func @transform_0(%arg0: i32, %arg1: i32, %arg2: i32, %arg3: i32) -> (i32, i32, i32) {
    %c0_i32 = arith.constant 0 : i32
    return %arg0, %arg1, %arg3 : i32, i32, i32
  }
  func.func @transform_1(%arg0: i32, %arg1: i32, %arg2: i32, %arg3: i32) -> (i32, i32, i32) {
    %c0_i32 = arith.constant 0 : i32
    return %arg0, %arg3, %arg2 : i32, i32, i32
  }
  func.func @transform_2(%arg0: i32, %arg1: i32, %arg2: i32, %arg3: i32) -> (i32, i32, i32) {
    %c0_i32 = arith.constant 0 : i32
    %c0_i32_0 = arith.constant 0 : i32
    return %arg0, %c0_i32, %arg2 : i32, i32, i32
  }
  func.func @transform_3(%arg0: i32, %arg1: i32, %arg2: i32, %arg3: i32) -> (i32, i32, i32) {
    %c0_i32 = arith.constant 0 : i32
    return %arg0, %arg1, %arg2 : i32, i32, i32
  }
}

module attributes {stable_mosaic.version = 11 : i64} {
  func.func @_matmul_bias_kernel(%arg0: i32, %arg1: i32, %arg2: i32, %arg3: i32, %arg4: memref<1x16x128xf32, #tpu.memory_space<vmem>>, %arg5: memref<1x128x32xf32, #tpu.memory_space<vmem>>, %arg6: memref<1x1x32xf32, #tpu.memory_space<vmem>>, %arg7: memref<1x16x32xf32, #tpu.memory_space<vmem>>, %arg8: memref<16x32xf32, #tpu.memory_space<vmem>>) attributes {dimension_semantics = [#tpu.dimension_semantics<parallel>, #tpu.dimension_semantics<parallel>, #tpu.dimension_semantics<parallel>, #tpu.dimension_semantics<arbitrary>], iteration_bounds = array<i64: 1, 1, 1, 1>, scalar_prefetch = 0 : i64, scratch_operands = 1 : i64, tpu.core_type = #tpu.core_type<tc>, window_params = [{transform_indices = @transform_0, window_bounds = array<i64: 1, 16, 128>}, {transform_indices = @transform_1, window_bounds = array<i64: 1, 128, 32>}, {transform_indices = @transform_2, window_bounds = array<i64: 1, 1, 32>}, {transform_indices = @transform_3, window_bounds = array<i64: 1, 16, 32>}]} {
    %c0_i32 = arith.constant 0 : i32
    %0 = arith.cmpi eq, %arg3, %c0_i32 : i32
    %1 = arith.extui %0 : i1 to i32
    %c0_i32_0 = arith.constant 0 : i32
    %2 = arith.cmpi ne, %1, %c0_i32_0 : i32
    scf.if %2 {
      %cst_12 = arith.constant 0.000000e+00 : f32
      %14 = vector.broadcast %cst_12 : f32 to vector<16x32xf32>
      %c0_13 = arith.constant 0 : index
      %c0_14 = arith.constant 0 : index
      %15 = vector.load %arg8[%c0_13, %c0_14] : memref<16x32xf32, #tpu.memory_space<vmem>>, vector<16x32xf32>
      tpu.vector_store %arg8[%c0_13, %c0_14], %14 {strides = array<i32>} : memref<16x32xf32, #tpu.memory_space<vmem>>, vector<16x32xf32>,
    } else {
    }
    %c0 = arith.constant 0 : index
    %c0_1 = arith.constant 0 : index
    %3 = vector.load %arg8[%c0, %c0_1] : memref<16x32xf32, #tpu.memory_space<vmem>>, vector<16x32xf32>
    %c0_2 = arith.constant 0 : index
    %c0_3 = arith.constant 0 : index
    %c0_4 = arith.constant 0 : index
    %4 = vector.load %arg4[%c0_2, %c0_3, %c0_4] : memref<1x16x128xf32, #tpu.memory_space<vmem>>, vector<1x16x128xf32>
    %5 = vector.shape_cast %4 : vector<1x16x128xf32> to vector<16x128xf32>
    %c0_5 = arith.constant 0 : index
    %c0_6 = arith.constant 0 : index
    %c0_7 = arith.constant 0 : index
    %6 = vector.load %arg5[%c0_5, %c0_6, %c0_7] : memref<1x128x32xf32, #tpu.memory_space<vmem>>, vector<1x128x32xf32>
    %7 = vector.shape_cast %6 : vector<1x128x32xf32> to vector<128x32xf32>
    %cst = arith.constant dense<0.000000e+00> : vector<16x32xf32>
    %8 = tpu.matmul %5, %7, %cst {dimension_numbers = #tpu.dot_dimension_numbers<[1], [0], [0], [1], [0, 0, 1, 1], [], []>} : vector<16x128xf32>, vector<128x32xf32>, vector<16x32xf32> -> vector<16x32xf32>
    %9 = arith.addf %3, %8 : vector<16x32xf32>
    %c0_8 = arith.constant 0 : index
    %c0_9 = arith.constant 0 : index
    %10 = vector.load %arg8[%c0_8, %c0_9] : memref<16x32xf32, #tpu.memory_space<vmem>>, vector<16x32xf32>
    tpu.vector_store %arg8[%c0_8, %c0_9], %9 {strides = array<i32>} : memref<16x32xf32, #tpu.memory_space<vmem>>, vector<16x32xf32>,
    %c0_i32_10 = arith.constant 0 : i32
    %11 = arith.cmpi eq, %arg3, %c0_i32_10 : i32
    %12 = arith.extui %11 : i1 to i32
    %c0_i32_11 = arith.constant 0 : i32
    %13 = arith.cmpi ne, %12, %c0_i32_11 : i32
    scf.if %13 {
      %c0_12 = arith.constant 0 : index
      %c0_13 = arith.constant 0 : index
      %14 = vector.load %arg8[%c0_12, %c0_13] : memref<16x32xf32, #tpu.memory_space<vmem>>, vector<16x32xf32>
      %c0_14 = arith.constant 0 : index
      %c0_15 = arith.constant 0 : index
      %c0_16 = arith.constant 0 : index
      %15 = vector.load %arg6[%c0_14, %c0_15, %c0_16] : memref<1x1x32xf32, #tpu.memory_space<vmem>>, vector<1x1x32xf32>
      %16 = vector.shape_cast %15 : vector<1x1x32xf32> to vector<1x32xf32>
      %17 = vector.broadcast %16 : vector<1x32xf32> to vector<16x32xf32>
      %18 = arith.addf %14, %17 : vector<16x32xf32>
      %c0_17 = arith.constant 0 : index
      %c0_18 = arith.constant 0 : index
      %c0_19 = arith.constant 0 : index
      %19 = vector.load %arg7[%c0_17, %c0_18, %c0_19] : memref<1x16x32xf32, #tpu.memory_space<vmem>>, vector<1x16x32xf32>
      %20 = vector.shape_cast %19 : vector<1x16x32xf32> to vector<16x32xf32>
      %21 = vector.shape_cast %18 : vector<16x32xf32> to vector<1x16x32xf32>
      tpu.vector_store %arg7[%c0_17, %c0_18, %c0_19], %21 {strides = array<i32>} : memref<1x16x32xf32, #tpu.memory_space<vmem>>, vector<1x16x32xf32>,
    } else {
    }
    return
  }
  func.func @transform_0(%arg0: i32, %arg1: i32, %arg2: i32, %arg3: i32) -> (i32, i32, i32) {
    %c0_i32 = arith.constant 0 : i32
    return %arg0, %arg1, %arg3 : i32, i32, i32
  }
  func.func @transform_1(%arg0: i32, %arg1: i32, %arg2: i32, %arg3: i32) -> (i32, i32, i32) {
    %c0_i32 = arith.constant 0 : i32
    return %arg0, %arg3, %arg2 : i32, i32, i32
  }
  func.func @transform_2(%arg0: i32, %arg1: i32, %arg2: i32, %arg3: i32) -> (i32, i32, i32) {
    %c0_i32 = arith.constant 0 : i32
    %c0_i32_0 = arith.constant 0 : i32
    return %arg0, %c0_i32, %arg2 : i32, i32, i32
  }
  func.func @transform_3(%arg0: i32, %arg1: i32, %arg2: i32, %arg3: i32) -> (i32, i32, i32) {
    %c0_i32 = arith.constant 0 : i32
    return %arg0, %arg1, %arg2 : i32, i32, i32
  }
}

</mosaic_0001>

<bundles_post_ra>
// kernel: multi_head_attention_forward.5
= control target key start
LH: loop header
LB: loop body
LE: loop exit
PB: predicated region body
PF: predicated region fallthrough
CT: control target
= control target key end

     0   :  { %vm19_vm0 = vcmask 261120   ;;  %v234_v2 = vmov 0.0   ;;  %s324_s0 = inlined_call_operand.vmem [shape: f32[1,16,128], index: 0, kind: input, shape index: {}]   ;;  %s325_s1 = inlined_call_operand.vmem [shape: f32[1,128,32], index: 1, kind: input, shape index: {}]   ;;  %s326_s2 = inlined_call_operand.vmem [shape: f32[1,1,32], index: 2, kind: input, shape index: {}]   ;;  %s327_s3 = inlined_call_operand.hbm [shape: f32[1,16,32], index: 3, kind: output, shape index: {}]  }
   0x1   :  { %v41_v0 = vld [vmem:[%s325_s1 + $0x78] sm:$0xff]  ;;  %v40_v1 = vld [vmem:[%s325_s1 + $0x70] sm:$0xff]  ;;  %21 = vst.msk [vmem:[#allocation2 + $0x8] sm:$0xff] %vm19_vm0, %v234_v2  ;;  %20 = vst.msk [vmem:[#allocation2] sm:$0xff] %vm19_vm0, %v234_v2 }
   0x2   :  { %173 = vmatprep.subr.mxu0 %v41_v0  ;;  %v39_v3 = vld [vmem:[%s325_s1 + $0x68] sm:$0xff]  ;;  %v38_v4 = vld [vmem:[%s325_s1 + $0x60] sm:$0xff]  ;;  %v37_v6 = vld [vmem:[%s325_s1 + $0x58] sm:$0xff] }
   0x3   :  { %174 = vmatpush3.msra.mxu0 %v41_v0  ;;  %v24_v5 = vld [vmem:[%s324_s0] sm:$0xff] }
   0x4   :  { %175 = vmatprep.subr.mxu0 %v40_v1  ;;  %205 = vmatprep.mubr.f32.mxu0 %v24_v5 }
   0x5   :  { %176 = vmatpush3.msra.mxu0 %v40_v1 }
   0x6   :  { %177 = vmatprep.subr.mxu0 %v39_v3 }
   0x7   :  { %178 = vmatpush3.msra.mxu0 %v39_v3 }
   0x8   :  { %8 = vsyncpa [#allocation4], 0  ;;  %179 = vmatprep.subr.mxu0 %v38_v4  ;;  %v36_v7 = vld [vmem:[%s325_s1 + $0x50] sm:$0xff]  ;;  %v35_v8 = vld [vmem:[%s325_s1 + $0x48] sm:$0xff]  ;;  %s235_s22 = smov [#allocation3]  }
   0x9   :  { %180 = vmatpush3.msra.mxu0 %v38_v4  ;;  %v34_v9 = vld [vmem:[%s325_s1 + $0x40] sm:$0xff]  ;;  %v33_v10 = vld [vmem:[%s325_s1 + $0x38] sm:$0xff]  ;;  %v32_v11 = vld [vmem:[%s325_s1 + $0x30] sm:$0xff]  ;;  %s143_s23 = sshll.u32 %s235_s22, 4  ;;  %s144_s23 = int_to_ptr.vmem [resolvable:$true] %s143_s23 }
   0xa   :  { %181 = vmatprep.subr.mxu0 %v37_v6  ;;  %v31_v12 = vld [vmem:[%s325_s1 + $0x28] sm:$0xff]  ;;  %v30_v13 = vld [vmem:[%s325_s1 + $0x20] sm:$0xff]  ;;  %v29_v14 = vld [vmem:[%s325_s1 + $0x18] sm:$0xff]  ;;  %p217_p1 = scmp.lt.s32.totalorder %s144_s23, %s144_s23 }
   0xb   :  { %182 = vmatpush3.msra.mxu0 %v37_v6  ;;  %v28_v15 = vld [vmem:[%s325_s1 + $0x10] sm:$0xff]  ;;  %v27_v16 = vld [vmem:[%s325_s1 + $0x8] sm:$0xff]  ;;  %v26_v17 = vld [vmem:[%s325_s1] sm:$0xff] }
   0xc   :  { %183 = vmatprep.subr.mxu0 %v36_v7  ;;  %v25_v18 = vld [vmem:[%s324_s0 + $0x8] sm:$0xff]  ;;  %v22_v21 = vld [vmem:[#allocation2] sm:$0xff]  ;;  %s212_s0 = scalar_lea.vmem %s144_s23, 256 }
   0xd   :  { %184 = vmatpush3.msra.mxu0 %v36_v7  ;;  %v23_v19 = vld [vmem:[#allocation2 + $0x8] sm:$0xff]  ;;  %v154_v25 = vld [vmem:[%s326_s2] ss:$0 sm:$0xff]  ;;  %p213_p0 = scmp.ne.s32.totalorder %s144_s23, %s212_s0  ;;  %p218_p2 = scmp.lt.s32.totalorder %s212_s0, %s212_s0 }
   0xe   :  { %185 = vmatprep.subr.mxu0 %v35_v8 }
   0xf   :  { %186 = vmatpush3.msra.mxu0 %v35_v8  ;;  %p219_p3 = por %p218_p2, %p217_p1 }
  0x10   :  { %187 = vmatprep.subr.mxu0 %v34_v9 }
  0x11   :  { %188 = vmatpush3.msra.mxu0 %v34_v9  ;;  %p220_p4 = pnand %p219_p3, %p213_p0 }
  0x12   :  { %189 = vmatprep.subr.mxu0 %v33_v10 }
  0x13   :  { %190 = vmatpush3.msra.mxu0 %v33_v10 }
  0x14   :  { %191 = vmatprep.subr.mxu0 %v32_v11 }
  0x15   :  { %192 = vmatpush3.msra.mxu0 %v32_v11 }
  0x16   :  { %193 = vmatprep.subr.mxu0 %v31_v12 }
  0x17   :  { %194 = vmatpush3.msra.mxu0 %v31_v12 }
  0x18   :  { %195 = vmatprep.subr.mxu0 %v30_v13 }
  0x19   :  { %196 = vmatpush3.msra.mxu0 %v30_v13 }
  0x1a   :  { %197 = vmatprep.subr.mxu0 %v29_v14 }
  0x1b   :  { %198 = vmatpush3.msra.mxu0 %v29_v14 }
  0x1c   :  { %199 = vmatprep.subr.mxu0 %v28_v15 }
  0x1d   :  { %200 = vmatpush3.msra.mxu0 %v28_v15 }
  0x1e   :  { %201 = vmatprep.subr.mxu0 %v27_v16 }
  0x1f   :  { %202 = vmatpush3.msra.mxu0 %v27_v16 }
  0x20   :  { %203 = vmatprep.subr.mxu0 %v26_v17 }
  0x21   :  { %204 = vmatpush3.msra.mxu0 %v26_v17 }
  0x22   :  { %206 = vmatmul.mubr.f32.vlgmr.msra.gmra.mxu0 %v25_v18 }
  0xe2   :  { %v207_v20 = vpop.f32.mrf.mxu0 }
  0xe3   :  { %v118_v22 = vadd.f32 %v207_v20, %v23_v19 }
  0xe4   :  { %v108_v23 = vpop.f32.mrf.mxu0 }
  0xe5   :  { %121 = vst.msk [vmem:[#allocation2 + $0x8] sm:$0xff] %vm19_vm0, %v118_v22  ;;  %v117_v24 = vadd.f32 %v108_v23, %v22_v21 }
  0xe7   :  { %120 = vst.msk [vmem:[#allocation2] sm:$0xff] %vm19_vm0, %v117_v24 }
  0xec   :  { %v126_v26 = vld [vmem:[#allocation2 + $0x8] sm:$0xff] }
  0xed   :  { %v135_v27 = vadd.f32 %v154_v25, %v126_v26 }
  0xee   :  { %v125_v28 = vld [vmem:[#allocation2] sm:$0xff] }
  0xef   :  { %v134_v29 = vadd.f32 %v154_v25, %v125_v28  ;;  %137 = vst.msk [vmem:[#allocation3 + $0x8] sm:$0xff] %vm19_vm0, %v135_v27 }
  0xf1   :  { %136 = vst.msk [vmem:[#allocation3] sm:$0xff] %vm19_vm0, %v134_v29 }
  0xf2   :  { %223 = shalt.err (!%p220_p4)
}
  0xf3   :  { %s236_s24 = smov 128   ;;  %s237_s2 = smov 8  }
  0xf4   :  { %149 = dma.vmem_to_hbm [thread:$0]  %s144_s23, 256, %s327_s3, [#allocation4], %s236_s24, %s236_s24, %s237_s2  }
  0xf5   :  { %232 = dma.done.wait [#allocation4], 256  }
  0xf6   :  { %233 = vsyncadd [#allocation4], 4294967040 }
  0xf7   :  { %153 = vsyncpa [#allocation4], 1 }

// kernel: multi_head_attention_forward.4
= control target key start
LH: loop header
LB: loop body
LE: loop exit
PB: predicated region body
PF: predicated region fallthrough
CT: control target
= control target key end

     0   :  { %s687_s12 = smov 0   ;;  %s689_s13 = smov 0   ;;  %s739_s0 = inlined_call_operand.vmem [shape: f32[2,8,128], index: 0, kind: input, shape index: {}]   ;;  %s740_s1 = inlined_call_operand.vmem [shape: f32[2,8,128], index: 1, kind: input, shape index: {}]   ;;  %s741_s2 = inlined_call_operand.vmem [shape: f32[2,8,128], index: 2, kind: input, shape index: {}]   ;;  %s742_s3 = inlined_call_operand.vmem [shape: f32[2,8,128], index: 3, kind: output, shape index: {}]  }
   0x1   :  { %s691_s14 = smov 0  }
   0x2 LB: > { %s32_s15 = sadd.s32 1, %s657_s13  ;;  %p581_p0 = scmp.ge.s32.totalorder %s661_s14, 1  ;;  %s661_s14 = sphi %s691_s14, %s13_s14   ;;  %s657_s13 = sphi %s689_s13, %s744_s13   ;;  %s653_s12 = sphi %s687_s12, %s743_s12  }
   0x3   : > { %p34_p1 = scmp.ge.s32.totalorder %s32_s15, 2  ;;  %p190_p2 = scmp.lt.s32.totalorder %s661_s14, 3 }
   0x5   : > { %s746_s15 = smov (%p34_p1, %s32_s15), 0  ;;  %p191_p3 = pnand %p581_p0, %p190_p2 }
   0x6   : > { %p232_p4 = scmp.lt.s32.totalorder (!%p191_p3), %s653_s12, 1 }
   0x7   : > { %194 = sbr.rel (%p191_p3) target bundleno = 788 (0x314), region = 32 }
   0xc   : > { %v663_v0 = vmov 0.0   ;;  %vm664_vm0 = vmmov 0   ;;  %s748_s12 = smov (!%p232_p4, %s653_s12), 1  ;;  %vm264_vm1 = vcmask 7168   ;;  %v665_v3 = vmov -1e+30  }
   0xd   : > { %593 = vmatprep.subr.mxu0 %v663_v0  ;;  %595 = vmatprep.mubr.msk.f32.mxu0 %vm664_vm0, %v663_v0  ;;  %s705_s16 = sshll.u32 %s748_s12, 3  ;;  %265 = vst.msk [vmem:[#allocation2] sm:$0xff] %vm264_vm1, %v665_v3  ;;  %266 = vst.msk [vmem:[#allocation3] sm:$0xff] %vm264_vm1, %v663_v0  ;;  %v343_v4 = vlaneseq  ;;  %vm350_vm3 = vcmask 64512   ;;  %v666_v11 = vmov 0  }
   0xe   : > { %598 = vmatprep.subr.mxu1 %v663_v0  ;;  %600 = vmatprep.mubr.msk.f32.mxu1 %vm664_vm0, %v663_v0  ;;  %s245_s19 = scalar_lea.vmem %s740_s1, %s705_s16  ;;  %s238_s22 = scalar_lea.vmem %s739_s0, %s705_s16 }
   0xf   : > { %v269_v1 = vld [vmem:[%s245_s19] sm:$0xff]  ;;  %v344_v5 = vand.u32 127, %v343_v4  ;;  %631 = vset.pattern.permute.xlu0 %v666_v11  ;;  %632 = vset.pattern.permute.xlu1 %v666_v11  ;;  %s252_s25 = scalar_lea.vmem %s741_s2, %s705_s16  ;;  %s259_s28 = scalar_lea.vmem %s742_s3, %s705_s16 }
  0x10   : > { %594 = vmatpush3.xpose.msra.mxu0 %v269_v1  ;;  %v268_v2 = vld [vmem:[%s238_s22] sm:$0xff] }
  0x11   : > { %vm347_vm2 = vcmp.lt.s32.totalorder %v344_v5, 8  ;;  %v270_v16 = vld [vmem:[%s252_s25] sm:$0xff] }
  0x12   : > { %599 = vmatpush3.msra.mxu1 %v270_v16 }
  0x13   : > { %596 = vmatmul.mubr.f32.vlgmr.msra.gmra.mxu0 %v268_v2 }
  0x14   : > { %v349_v12 = vld [vmem:[#allocation2] sm:$0xff]  ;;  %v366_v24 = vld [vmem:[#allocation3] sm:$0xff] }
  0xd3   : > { %v337_v6 = vpop.f32.mrf.mxu0 }
  0xd4   : > { %v341_v7 = vmul.f32 0.088388346, %v337_v6 }
  0xd5   : > { %v597_v8 = vpop.f32.mrf.mxu0 }
  0xd6   : > { %v348_v9 = vsel %vm347_vm2, %v341_v7, -1e+30 }
  0xd7   : > { %v351_v10 = vsel %vm350_vm3, %v348_v9, -inf }
  0xd8   : > { %352 = vmax.xlane.f32.xlu0 %v351_v10 }
 0x161   : > { %v353_v13 = vpop.xlane.xlu0 %352 }
 0x162   : > { %v354_v14 = vmax.f32 %v349_v12, %v353_v13 }
 0x164   : > { %v355_v15 = vsub.f32 %v349_v12, %v354_v14  ;;  %456 = vst.msk [vmem:[#allocation2] sm:$0xff] %vm264_vm1, %v354_v14  ;;  %360 = vperm.xlu0 %631, %v354_v14  }
 0x166   : > { %v356_v22 = vmul.f32 1.442695, %v355_v15 }
 0x1df   : > { %v361_v17 = vpop.permute.xlu0 %360 }
 0x1e0   : > { %v363_v18 = vsub.f32 %v348_v9, %v361_v17 }
 0x1e2   : > { %v364_v19 = vmul.f32 1.442695, %v363_v18 }
 0x1e4   : > { %633 = vpow2.f32 %v364_v19 }
 0x1e5   : > { %635 = vpow2.f32 %v356_v22 }
 0x1f1   : > { %v634_v20 = vpop.eup %633 }
 0x1f2   : > { %601 = vmatmul.mubr.msk.f32.vlgmr.msra.gmra.mxu1 %vm350_vm3, %v634_v20  ;;  %v368_v21 = vsel %vm350_vm3, %v634_v20, 0.0  ;;  %v636_v23 = vpop.eup %635 }
 0x1f3   : > { %369 = vadd.xlane.f32.xlu1 %v368_v21  ;;  %v367_v25 = vmul.f32 %v636_v23, %v366_v24 }
 0x27c   : > { %v370_v26 = vpop.xlane.xlu1 %369 }
 0x27d   : > { %v371_v27 = vadd.f32 %v370_v26, %v367_v25 }
 0x27f   : > { %373 = vst.msk [vmem:[#allocation3] sm:$0xff] %vm264_vm1, %v371_v27 }
 0x286   : > { %v461_v28 = vld [vmem:[#allocation3] sm:$0xff] }
 0x287   : > { %464 = vperm.xlu1 %632, %v461_v28  }
 0x28b   : > { %377 = vperm.xlu1 %632, %v636_v23  }
 0x2b2   : > { %v450_v29 = vpop.f32.mrf.mxu1 }
 0x2b4   : > { %v602_v30 = vpop.f32.mrf.mxu1 }
 0x302   : > { %v465_v31 = vpop.permute.xlu1 %464 }
 0x303   : > { %637 = vrcp.f32 %v465_v31 }
 0x306   : > { %v378_v32 = vpop.permute.xlu1 %377 }
 0x307   : > { %v380_v33 = vmul.f32 0.0, %v378_v32 }
 0x309   : > { %v454_v34 = vadd.f32 %v450_v29, %v380_v33 }
 0x310   : > { %v638_v35 = vpop.eup %637 }
 0x311   : > { %v468_v36 = vmul.f32 %v638_v35, %v454_v34 }
 0x313   : > { %469 = vst [vmem:[%s259_s28] sm:$0xff] %v468_v36 }
 0x314 PF: > { %s13_s14 = sadd.s32 1, %s661_s14   ;;  %s743_s12 = smov %s657_s13 }
 0x315   : > { %p10_p5 = scmp.ge.s32.totalorder %s13_s14, 4   ;;  %s744_s13 = smov %s746_s15 }
 0x317   :  { %12 = sbr.rel (!%p10_p5) target bundleno = 2 (0x2), region = 76 }

// kernel: multi_head_attention_forward.3
= control target key start
LH: loop header
LB: loop body
LE: loop exit
PB: predicated region body
PF: predicated region fallthrough
CT: control target
= control target key end

     0   :  { %8 = vsyncpa [#allocation4], 0  ;;  %s892_s0 = inlined_call_operand.vmem [shape: f32[3,16,32], index: 0, kind: input, shape index: {}]   ;;  %s893_s1 = inlined_call_operand.vmem [shape: f32[3,32,128], index: 1, kind: input, shape index: {}]   ;;  %s894_s2 = inlined_call_operand.hbm [shape: f32[3,1,128], index: 2, kind: input, shape index: {}]   ;;  %s895_s3 = inlined_call_operand.vmem [shape: f32[3,16,128], index: 3, kind: output, shape index: {}]  }
   0x1   :  { %10 = vsyncpa [#allocation4 + $0x1], 0  ;;  %s784_s12 = smov 0   ;;  %s786_s13 = smov 0  }
   0x2   :  { %s788_s14 = smov 0   ;;  %s790_s15 = smov 0  }
   0x3   :  { %s792_s16 = smov 0   ;;  %s794_s17 = smov 0  }
   0x4 LB: > { %s591_s18 = sadd.s32 4294967295, %s761_s17   ;;  %s42_s19 = sadd.s32 1, %s757_s16  ;;  %s761_s17 = sphi %s794_s17, %s16_s17   ;;  %s757_s16 = sphi %s792_s16, %s903_s16   ;;  %s753_s15 = sphi %s790_s15, %s902_s15   ;;  %s749_s14 = sphi %s788_s14, %s901_s14   ;;  %s745_s13 = sphi %s786_s13, %s900_s13   ;;  %s741_s12 = sphi %s784_s12, %s899_s12  }
   0x5   : > { %p44_p0 = scmp.ge.s32.totalorder %s42_s19, 3  ;;  %s111_s20 = sadd.s32 1, %s749_s14 }
   0x6   : > { %p118_p1 = scmp.ne.s32.totalorder %s749_s14, %s745_s13  ;;  %p119_p2 = scmp.eq.s32.totalorder %s761_s17, 0 }
   0x7   : > { %s905_s19 = smov (%p44_p0, %s42_s19), 0  ;;  %p124_p4 = scmp.ne.s32.totalorder %s745_s13, %s741_s12 }
   0x8   : > { %p820_p3 = por %p119_p2, %p118_p1  ;;  %s106_s22 = ssub.s32 %s757_s16, %s905_s19 }
   0x9   : > { %p125_p5 = scmp.eq.s32.totalorder %s591_s18, 0  ;;  %p109_p6 = scmp.eq.s32.totalorder %s106_s22, 0 }
   0xa   : > { %p634_p8 = scmp.lt.s32.totalorder %s761_s17, 3  ;;  %s210_s25 = sand.u32 1, %s749_s14  }
   0xb   : > { %p827_p7 = por %p125_p5, %p124_p4  ;;  %s595_s26 = sshll.u32 %s757_s16, 4 }
   0xc   : > { %s833_s24 = scalar_select %p109_p6, %s749_s14, %s111_s20  }
   0xd   : > { %s219_s29 = scalar_lea.hbm %s894_s2, %s595_s26  ;;  %s213_s30 = scalar_lea.vmem [#allocation3], %s210_s25 }
   0xe   : > { %s221_s4 = sshll.u32 %s213_s30, 4  ;;  %p842_p9 = pnand %p634_p8, %p820_p3  ;;  %s222_s4 = int_to_ptr.vmem [resolvable:$true] %s221_s4 }
   0xf   : > { %p596_p10 = scmp.ge.s32.totalorder %s761_s17, 1  ;;  %p226_p11 = scmp.lt.s32.totalorder %s761_s17, 4 }
  0x10   : > { %s211_s6 = scalar_lea.sflag [#allocation4], %s210_s25  ;;  %p685_p12 = pneg %p842_p9 }
  0x11   : > { %s696_s7 = scalar_lea.vmem %s222_s4, 16  ;;  %s763_s8 = smov [#allocation3]  }
  0x12   : > { %p697_p13 = scmp.ne.s32.totalorder %s222_s4, %s696_s7  ;;  %s701_s9 = sshll.u32 %s763_s8, 4  ;;  %s702_s9 = int_to_ptr.vmem [resolvable:$false] %s701_s9 }
  0x13   : > { %s703_s10 = scalar_lea.vmem %s702_s9, 32  ;;  %p704_p2 = scmp.lt.s32.totalorder %s222_s4, %s702_s9 }
  0x14   : > { %p699_p0 = pnand %p697_p13, %p685_p12  ;;  %p705_p4 = scmp.lt.s32.totalorder %s703_s10, %s696_s7 }
  0x16   : > { %p700_p1 = pneg %p699_p0  ;;  %p706_p3 = por %p705_p4, %p704_p2 }
  0x18   : > { %p707_p5 = pnand %p706_p3, %p700_p1 }
  0x1a   : > { %710 = shalt.err (!%p707_p5)
}
  0x1b   : > { %633 = dma.hbm_to_vmem [thread:$0]  (!%p842_p9), %s219_s29, 16, %s222_s4, %s211_s6  }
  0x1c   : > { %p227_p6 = pnand %p596_p10, %p226_p11 }
  0x1d   : > { %s232_s11 = sand.u32 (!%p227_p6), 1, %s745_s13  }
  0x1e   : > { %230 = sbr.rel (%p227_p6) target bundleno = 248 (0xf8), region = 32  ;;  %s233_s12 = scalar_lea.sflag (!%p227_p6), [#allocation4], %s232_s11 }
  0x1f   : > { %s235_s18 = scalar_lea.vmem (!%p227_p6), [#allocation3], %s232_s11 }
  0x23   : > { %736 = dma.done.wait (%p827_p7), %s233_s12, 16  }
  0x24   : > { %738 = vsyncadd (%p827_p7), %s233_s12, 4294967280  ;;  %p289_p8 = scmp.lt.s32.totalorder %s753_s15, 2  ;;  %vm341_vm0 = vcmask 261120   ;;  %v605_v6 = vld [vmem:[%s235_s18] ss:$0 sm:$0xff] }
  0x26   : > { %s907_s15 = smov (!%p289_p8, %s753_s15), 2 }
  0x27   : > { %s609_s20 = sshll.u32 %s907_s15, 5  ;;  %s608_s21 = sshll.u32 %s907_s15, 4 }
  0x28   : > { %s312_s26 = scalar_lea.vmem %s893_s1, %s609_s20  ;;  %s299_s29 = scalar_lea.vmem %s892_s0, %s608_s21 }
  0x29   : > { %v340_v0 = vld [vmem:[%s312_s26 + $0x18] sm:$0xff]  ;;  %v339_v1 = vld [vmem:[%s312_s26 + $0x10] sm:$0xff]  ;;  %v335_v2 = vld [vmem:[%s299_s29] sm:$0xff]  ;;  %s325_s30 = scalar_lea.vmem %s895_s3, %s608_s21 }
  0x2a   : > { %617 = vmatprep.subr.mxu0 %v340_v0  ;;  %v338_v3 = vld [vmem:[%s312_s26 + $0x8] sm:$0xff]  ;;  %625 = vmatprep.mubr.msk.f32.mxu0 %vm341_vm0, %v335_v2  ;;  %v337_v4 = vld [vmem:[%s312_s26] sm:$0xff] }
  0x2b   : > { %618 = vmatpush3.msra.mxu0 %v340_v0  ;;  %v336_v5 = vld [vmem:[%s299_s29 + $0x8] sm:$0xff] }
  0x2c   : > { %619 = vmatprep.subr.mxu0 %v339_v1 }
  0x2d   : > { %620 = vmatpush3.msra.mxu0 %v339_v1 }
  0x2e   : > { %621 = vmatprep.subr.mxu0 %v338_v3 }
  0x2f   : > { %622 = vmatpush3.msra.mxu0 %v338_v3 }
  0x30   : > { %623 = vmatprep.subr.mxu0 %v337_v4 }
  0x31   : > { %624 = vmatpush3.msra.mxu0 %v337_v4 }
  0x32   : > { %626 = vmatmul.mubr.msk.f32.vlgmr.msra.gmra.mxu0 %vm341_vm0, %v336_v5 }
  0xf2   : > { %v627_v7 = vpop.f32.mrf.mxu0 }
  0xf3   : > { %v440_v8 = vadd.f32 %v627_v7, %v605_v6 }
  0xf4   : > { %v414_v9 = vpop.f32.mrf.mxu0 }
  0xf5   : > { %442 = vst [vmem:[%s325_s30 + $0x8] sm:$0xff] %v440_v8  ;;  %v439_v10 = vadd.f32 %v605_v6, %v414_v9 }
  0xf7   : > { %441 = vst [vmem:[%s325_s30] sm:$0xff] %v439_v10 }
  0xf8 PF: > { %s16_s17 = sadd.s32 1, %s761_s17   ;;  %s899_s12 = smov %s745_s13 }
  0xf9   : > { %p13_p7 = scmp.ge.s32.totalorder %s16_s17, 5   ;;  %s900_s13 = smov %s749_s14 }
  0xfa   : > { %s901_s14 = smov %s833_s24  ;;  %s902_s15 = smov %s757_s16 }
  0xfb   : > { %s903_s16 = smov %s905_s19  ;;  %15 = sbr.rel (!%p13_p7) target bundleno = 4 (0x4), region = 86 }
 0x100   :  { %479 = vsyncpa [#allocation4], 1 }
 0x101   :  { %481 = vsyncpa [#allocation4 + $0x1], 1 }

</bundles_post_ra>
